<compile_context>
chip_gen: v6e
topology: v6e:2x2x1
jax: 0.10.0
libtpu: 0.0.40
codegen_flags: <defaults>
</compile_context>

<pallas_src>
import functools

import jax
import jax.numpy as jnp
from jax import lax
from jax.experimental import pallas as pl
from jax.experimental.pallas import tpu as pltpu


def _round_up(n, m):
    return ((n + m - 1) // m) * m


def _pick_tm(M, K, Dp, x_bytes, out_bytes):
    """Largest power-of-two row tile (<=512) whose double-buffered tiles fit a
    conservative VMEM budget (safe for v7x's 32 MiB scoped default)."""
    budget = 24 << 20
    tm = 512
    while tm > 8 and 2 * tm * (K * x_bytes + Dp * out_bytes) > budget:
        tm //= 2
    return max(8, min(tm, _round_up(M, 8)))


def _patch_embed_kernel(x_ref, w_ref, b_ref, g_ref, beta_ref, o_ref, *, d_true):
    # x_ref: (tm, K)   w_ref: (K, Dp)   b/g/beta: (1, Dp)   o_ref: (tm, Dp)
    # Conv-as-matmul hot path: operands go to the MXU in their native dtype,
    # accumulation in f32 (no per-step upcasts of x / w).
    y = jnp.dot(x_ref[...], w_ref[...], preferred_element_type=jnp.float32)
    y = y + b_ref[...]

    # LayerNorm over the *true* embed dim only.  Lanes >= d_true are zero
    # padding (weight columns / bias padded with zeros), so sum(y) already
    # covers only real channels; the centered term is masked before squaring.
    lane = lax.broadcasted_iota(jnp.int32, y.shape, 1)
    valid = lane < d_true
    inv_d = jnp.float32(1.0 / d_true)
    mean = jnp.sum(y, axis=-1, keepdims=True) * inv_d
    centered = jnp.where(valid, y - mean, 0.0)
    var = jnp.sum(centered * centered, axis=-1, keepdims=True) * inv_d
    yhat = centered * lax.rsqrt(var + jnp.float32(1e-5))
    # Padded lanes get gamma = beta = 0, so the lane-dense store writes zeros
    # there; the wrapper slices them away.
    o_ref[...] = (yhat * g_ref[...] + beta_ref[...]).astype(o_ref.dtype)


def patch_embed_forward(x, conv_w, conv_b, ln_g, ln_b, patch_size):
    """x: [B, C, H, W] NCHW.  conv_w: [D, C, ph, pw].  Returns ((B, N, D), (Hp, Wp))."""
    B, C, H, W = x.shape
    ph, pw = patch_size
    D = conv_w.shape[0]
    Hp, Wp = H // ph, W // pw
    N = Hp * Wp
    M = B * N
    K = C * ph * pw

    # Lane-dense embed dim for unmasked vector stores / full MXU output tiles.
    Dp = _round_up(D, 128)

    x_bytes = jnp.dtype(x.dtype).itemsize
    tm = _pick_tm(M, K, Dp, x_bytes, x_bytes)
    Mp = _round_up(M, tm)

    # ---- glue: non-overlapping patches as rows, flattened in (c, kh, kw) ----
    # [B, C, Hp, ph, Wp, pw] -> [B, Hp, Wp, C, ph, pw] -> [M, K]
    # (allow_input_fusion lets XLA fuse this into the pallas_call input DMA.)
    xp = x.reshape(B, C, Hp, ph, Wp, pw)
    xp = jnp.transpose(xp, (0, 2, 4, 1, 3, 5)).reshape(M, K)
    if Mp != M:
        xp = jnp.pad(xp, ((0, Mp - M), (0, 0)))

    # Conv weight as a [K, Dp] matmul weight, padded lanes zero.
    w_mat = conv_w.reshape(D, K).T
    w_mat = jnp.pad(w_mat, ((0, 0), (0, Dp - D)))
    b_row = jnp.pad(conv_b.astype(jnp.float32).reshape(1, D), ((0, 0), (0, Dp - D)))
    g_row = jnp.pad(ln_g.astype(jnp.float32).reshape(1, D), ((0, 0), (0, Dp - D)))
    beta_row = jnp.pad(ln_b.astype(jnp.float32).reshape(1, D), ((0, 0), (0, Dp - D)))

    w_bytes = jnp.dtype(w_mat.dtype).itemsize
    vmem_bytes = (
        2 * tm * K * x_bytes        # x tile, double-buffered
        + 2 * tm * Dp * x_bytes     # out tile, double-buffered
        + 2 * K * Dp * w_bytes      # weight (resident, revisited block)
        + 6 * Dp * 4                # bias / gamma / beta rows
    )
    vmem_limit = min(int(vmem_bytes * 1.5) + (2 << 20), 64 << 20)

    cost = pl.CostEstimate(
        flops=2 * Mp * K * Dp,
        transcendentals=0,
        bytes_accessed=(Mp * K + K * Dp + Mp * Dp) * x_bytes,
    )

    out = pl.pallas_call(
        functools.partial(_patch_embed_kernel, d_true=D),
        out_shape=jax.ShapeDtypeStruct((Mp, Dp), x.dtype),
        grid_spec=pltpu.PrefetchScalarGridSpec(
            num_scalar_prefetch=0,
            grid=(Mp // tm,),
            in_specs=[
                pl.BlockSpec((tm, K), lambda i: (i, 0)),
                pl.BlockSpec((K, Dp), lambda i: (0, 0)),
                pl.BlockSpec((1, Dp), lambda i: (0, 0)),
                pl.BlockSpec((1, Dp), lambda i: (0, 0)),
                pl.BlockSpec((1, Dp), lambda i: (0, 0)),
            ],
            out_specs=pl.BlockSpec((tm, Dp), lambda i: (i, 0)),
        ),
        compiler_params=pltpu.CompilerParams(
            dimension_semantics=("parallel",),
            # Allow XLA to fuse the patch transpose/reshape (operand 0) into
            # the kernel's input DMA instead of materializing it in HBM.
            allow_input_fusion=[True, False, False, False, False],
            vmem_limit_bytes=vmem_limit,
        ),
        cost_estimate=cost,
    )(xp, w_mat, b_row, g_row, beta_row)

    return out[:M, :D].reshape(B, N, D), (Hp, Wp)


if __name__ == "__main__":
    # Small config consistent with the module: img_size=16, patch_size=4,
    # in_chans=4, embed_dim=32, stride=None.
    B, C, H, W = 2, 4, 16, 16
    ph, pw = 4, 4
    D = 32

    key = jax.random.PRNGKey(0)
    kx, kw, kb = jax.random.split(key, 3)
    x = jax.random.normal(kx, (B, C, H, W), dtype=jnp.float32)

    conv_w = jax.random.normal(kw, (D, C, ph, pw), dtype=jnp.float32) * 0.02
    conv_b = jax.random.normal(kb, (D,), dtype=jnp.float32) * 0.02
    ln_g = jnp.ones((D,), dtype=jnp.float32)   # LayerNorm default init
    ln_b = jnp.zeros((D,), dtype=jnp.float32)

    out, (Hp, Wp) = patch_embed_forward(x, conv_w, conv_b, ln_g, ln_b, (ph, pw))
    out = jax.block_until_ready(out)

    # Pure-JAX reference (conv-as-matmul + LayerNorm, eps=1e-5, biased var).
    xp_ref = x.reshape(B, C, H // ph, ph, W // pw, pw)
    xp_ref = jnp.transpose(xp_ref, (0, 2, 4, 1, 3, 5)).reshape(B * Hp * Wp, C * ph * pw)
    y_ref = xp_ref @ conv_w.reshape(D, -1).T + conv_b
    mu = jnp.mean(y_ref, axis=-1, keepdims=True)
    var = jnp.mean((y_ref - mu) ** 2, axis=-1, keepdims=True)
    ref = ((y_ref - mu) * lax.rsqrt(var + 1e-5)) * ln_g + ln_b
    ref = ref.reshape(B, Hp * Wp, D)

    assert out.shape == (B, (H // ph) * (W // pw), D)
    assert (Hp, Wp) == (H // ph, W // pw)
    assert bool(jnp.all(jnp.isfinite(out)))
    err = float(jnp.max(jnp.abs(out - ref)))
    assert err < 5e-3, f"max abs err {err}"
    print("KERNEL_OK")
</pallas_src>

<mosaic_0001>
module attributes {stable_mosaic.version = 11 : i64} {
  func.func @_patch_embed_kernel(%arg0: i32, %arg1: memref<32x64xf32, #tpu.memory_space<vmem>>, %arg2: memref<64x128xf32, #tpu.memory_space<vmem>>, %arg3: memref<1x128xf32, #tpu.memory_space<vmem>>, %arg4: memref<1x128xf32, #tpu.memory_space<vmem>>, %arg5: memref<1x128xf32, #tpu.memory_space<vmem>>, %arg6: memref<32x128xf32, #tpu.memory_space<vmem>>) attributes {dimension_semantics = [#tpu.dimension_semantics<parallel>], iteration_bounds = array<i64: 1>, scalar_prefetch = 0 : i64, scratch_operands = 0 : i64, tpu.core_type = #tpu.core_type<tc>, window_params = [{transform_indices = @transform_0, window_bounds = array<i64: 32, 64>}, {pipeline_mode = #tpu.pipeline_mode<synchronous>, transform_indices = @transform_1, window_bounds = array<i64: 64, 128>}, {pipeline_mode = #tpu.pipeline_mode<synchronous>, transform_indices = @transform_2, window_bounds = array<i64: 1, 128>}, {pipeline_mode = #tpu.pipeline_mode<synchronous>, transform_indices = @transform_3, window_bounds = array<i64: 1, 128>}, {pipeline_mode = #tpu.pipeline_mode<synchronous>, transform_indices = @transform_4, window_bounds = array<i64: 1, 128>}, {transform_indices = @transform_5, window_bounds = array<i64: 32, 128>}]} {
    %c0 = arith.constant 0 : index
    %c0_0 = arith.constant 0 : index
    %0 = vector.load %arg1[%c0, %c0_0] : memref<32x64xf32, #tpu.memory_space<vmem>>, vector<32x64xf32>
    %c0_1 = arith.constant 0 : index
    %c0_2 = arith.constant 0 : index
    %1 = vector.load %arg2[%c0_1, %c0_2] : memref<64x128xf32, #tpu.memory_space<vmem>>, vector<64x128xf32>
    %cst = arith.constant dense<0.000000e+00> : vector<32x128xf32>
    %2 = tpu.matmul %0, %1, %cst {dimension_numbers = #tpu.dot_dimension_numbers<[1], [0], [0], [1], [0, 0, 1, 1], [], []>} : vector<32x64xf32>, vector<64x128xf32>, vector<32x128xf32> -> vector<32x128xf32>
    %c0_3 = arith.constant 0 : index
    %c0_4 = arith.constant 0 : index
    %3 = vector.load %arg3[%c0_3, %c0_4] : memref<1x128xf32, #tpu.memory_space<vmem>>, vector<1x128xf32>
    %4 = vector.broadcast %3 : vector<1x128xf32> to vector<32x128xf32>
    %5 = arith.addf %2, %4 : vector<32x128xf32>
    %6 = tpu.iota {dimensions = array<i32: 1>} : vector<32x128xi32>
    %c32_i32 = arith.constant 32 : i32
    %7 = vector.broadcast %c32_i32 : i32 to vector<32x128xi32>
    %8 = arith.cmpi slt, %6, %7 : vector<32x128xi32>
    %cst_5 = arith.constant dense<0.000000e+00> : vector<32xf32>
    %9 = vector.multi_reduction <add>, %5, %cst_5 [1] : vector<32x128xf32> to vector<32xf32>
    %10 = vector.shape_cast %9 : vector<32xf32> to vector<32x1xf32>
    %cst_6 = arith.constant 3.125000e-02 : f32
    %11 = vector.broadcast %cst_6 : f32 to vector<32x1xf32>
    %12 = arith.mulf %10, %11 : vector<32x1xf32>
    %13 = vector.broadcast %12 : vector<32x1xf32> to vector<32x128xf32>
    %14 = arith.subf %5, %13 : vector<32x128xf32>
    %cst_7 = arith.constant 0.000000e+00 : f32
    %15 = vector.broadcast %cst_7 : f32 to vector<32x128xf32>
    %16 = arith.select %8, %14, %15 : vector<32x128xi1>, vector<32x128xf32>
    %17 = arith.mulf %16, %16 : vector<32x128xf32>
    %cst_8 = arith.constant dense<0.000000e+00> : vector<32xf32>
    %18 = vector.multi_reduction <add>, %17, %cst_8 [1] : vector<32x128xf32> to vector<32xf32>
    %19 = vector.shape_cast %18 : vector<32xf32> to vector<32x1xf32>
    %cst_9 = arith.constant 3.125000e-02 : f32
    %20 = vector.broadcast %cst_9 : f32 to vector<32x1xf32>
    %21 = arith.mulf %19, %20 : vector<32x1xf32>
    %cst_10 = arith.constant 9.99999974E-6 : f32
    %22 = vector.broadcast %cst_10 : f32 to vector<32x1xf32>
    %23 = arith.addf %21, %22 : vector<32x1xf32>
    %24 = math.rsqrt %23 : vector<32x1xf32>
    %25 = vector.broadcast %24 : vector<32x1xf32> to vector<32x128xf32>
    %26 = arith.mulf %16, %25 : vector<32x128xf32>
    %c0_11 = arith.constant 0 : index
    %c0_12 = arith.constant 0 : index
    %27 = vector.load %arg4[%c0_11, %c0_12] : memref<1x128xf32, #tpu.memory_space<vmem>>, vector<1x128xf32>
    %28 = vector.broadcast %27 : vector<1x128xf32> to vector<32x128xf32>
    %29 = arith.mulf %26, %28 : vector<32x128xf32>
    %c0_13 = arith.constant 0 : index
    %c0_14 = arith.constant 0 : index
    %30 = vector.load %arg5[%c0_13, %c0_14] : memref<1x128xf32, #tpu.memory_space<vmem>>, vector<1x128xf32>
    %31 = vector.broadcast %30 : vector<1x128xf32> to vector<32x128xf32>
    %32 = arith.addf %29, %31 : vector<32x128xf32>
    %c0_15 = arith.constant 0 : index
    %c0_16 = arith.constant 0 : index
    %33 = vector.load %arg6[%c0_15, %c0_16] : memref<32x128xf32, #tpu.memory_space<vmem>>, vector<32x128xf32>
    tpu.vector_store %arg6[%c0_15, %c0_16], %32 {strides = array<i32>} : memref<32x128xf32, #tpu.memory_space<vmem>>, vector<32x128xf32>,
    return
  }
  func.func @transform_0(%arg0: i32) -> (i32, i32) {
    %c0_i32 = arith.constant 0 : i32
    %c0_i32_0 = arith.constant 0 : i32
    return %arg0, %c0_i32 : i32, i32
  }
  func.func @transform_1(%arg0: i32) -> (i32, i32) {
    %c0_i32 = arith.constant 0 : i32
    %c0_i32_0 = arith.constant 0 : i32
    %c0_i32_1 = arith.constant 0 : i32
    return %c0_i32, %c0_i32_0 : i32, i32
  }
  func.func @transform_2(%arg0: i32) -> (i32, i32) {
    %c0_i32 = arith.constant 0 : i32
    %c0_i32_0 = arith.constant 0 : i32
    %c0_i32_1 = arith.constant 0 : i32
    return %c0_i32, %c0_i32_0 : i32, i32
  }
  func.func @transform_3(%arg0: i32) -> (i32, i32) {
    %c0_i32 = arith.constant 0 : i32
    %c0_i32_0 = arith.constant 0 : i32
    %c0_i32_1 = arith.constant 0 : i32
    return %c0_i32, %c0_i32_0 : i32, i32
  }
  func.func @transform_4(%arg0: i32) -> (i32, i32) {
    %c0_i32 = arith.constant 0 : i32
    %c0_i32_0 = arith.constant 0 : i32
    %c0_i32_1 = arith.constant 0 : i32
    return %c0_i32, %c0_i32_0 : i32, i32
  }
  func.func @transform_5(%arg0: i32) -> (i32, i32) {
    %c0_i32 = arith.constant 0 : i32
    %c0_i32_0 = arith.constant 0 : i32
    return %arg0, %c0_i32 : i32, i32
  }
}

</mosaic_0001>

<bundles_post_ra>
// kernel: tpu_custom_call.1
= control target key start
LH: loop header
LB: loop body
LE: loop exit
PB: predicated region body
PF: predicated region fallthrough
CT: control target
= control target key end

     0   :  { %10 = vsyncpa [#allocation3], 0  ;;  %s463_s0 = inlined_call_operand.hbm [shape: f32[32,64], index: 0, kind: input, shape index: {}]   ;;  %s464_s1 = inlined_call_operand.hbm [shape: f32[64,128], index: 1, kind: input, shape index: {}]   ;;  %s465_s2 = inlined_call_operand.vmem [shape: f32[1,128], index: 2, kind: input, shape index: {}]   ;;  %s466_s3 = inlined_call_operand.vmem [shape: f32[1,128], index: 3, kind: input, shape index: {}]   ;;  %s467_s4 = inlined_call_operand.vmem [shape: f32[1,128], index: 4, kind: input, shape index: {}]   ;;  %s468_s5 = inlined_call_operand.hbm [shape: f32[32,128], index: 5, kind: output, shape index: {}]  }
   0x1   :  { %11 = vsyncpa [#allocation6], 0 }
   0x2   :  { %12 = vsyncpa [#allocation4], 0  ;;  %s397_s18 = smov [#allocation2]  }
   0x3   :  { %s18_s19 = sshll.u32 %s397_s18, 4  ;;  %s19_s19 = int_to_ptr.vmem [resolvable:$true] %s18_s19 }
   0x4   :  { %s339_s20 = scalar_lea.vmem %s19_s19, 512  ;;  %p344_p1 = scmp.lt.s32.totalorder %s19_s19, %s19_s19 }
   0x5   :  { %p340_p0 = scmp.ne.s32.totalorder %s19_s19, %s339_s20  ;;  %p345_p2 = scmp.lt.s32.totalorder %s339_s20, %s339_s20 }
   0x7   :  { %p346_p3 = por %p345_p2, %p344_p1 }
   0x9   :  { %p347_p4 = pnand %p346_p3, %p340_p0 }
   0xb   :  { %350 = shalt.err (!%p347_p4)
}
   0xc   :  { %s398_s21 = smov 128   ;;  %s399_s22 = smov 8  }
   0xd   :  { %24 = dma.hbm_to_vmem [thread:$0]  %s463_s0, 512, %s19_s19, [#allocation3], %s398_s21, %s398_s21, %s399_s22  }
   0xe   :  { %s400_s25 = smov [#allocation5]  }
   0xf   :  { %s30_s26 = sshll.u32 %s400_s25, 4  ;;  %s31_s26 = int_to_ptr.vmem [resolvable:$true] %s30_s26 }
  0x10   :  { %s359_s27 = scalar_lea.vmem %s31_s26, 1024  ;;  %p364_p6 = scmp.lt.s32.totalorder %s31_s26, %s31_s26 }
  0x11   :  { %p360_p5 = scmp.ne.s32.totalorder %s31_s26, %s359_s27  ;;  %p365_p7 = scmp.lt.s32.totalorder %s359_s27, %s359_s27 }
  0x13   :  { %p366_p8 = por %p365_p7, %p364_p6 }
  0x15   :  { %p367_p9 = pnand %p366_p8, %p360_p5 }
  0x17   :  { %370 = shalt.err (!%p367_p9)
}
  0x18   :  { %36 = dma.hbm_to_vmem [thread:$0]  %s464_s1, 1024, %s31_s26, [#allocation6], %s398_s21, %s398_s21, %s399_s22  }
  0x19   :  { %391 = dma.done.wait [#allocation3], 512  }
  0x1a   :  { %392 = vsyncadd [#allocation3], 4294966784 }
  0x1b   :  { %393 = dma.done.wait [#allocation6], 1024  }
  0x1c   :  { %394 = vsyncadd [#allocation6], 4294966272  ;;  %v60_v0 = vld [vmem:[#allocation5 + $0x38] sm:$0xff]  ;;  %v59_v1 = vld [vmem:[#allocation5 + $0x30] sm:$0xff]  ;;  %vm68_vm0 = vcmask 523264   ;;  %v166_v21 = vlaneseq  ;;  %s401_s8 = smov [#allocation7]  }
  0x1d   :  { %280 = vmatprep.subr.mxu0 %v60_v0  ;;  %302 = vmatprep.subr.mxu1 %v60_v0  ;;  %v58_v2 = vld [vmem:[#allocation5 + $0x28] sm:$0xff]  ;;  %v57_v3 = vld [vmem:[#allocation5 + $0x20] sm:$0xff]  ;;  %v56_v4 = vld [vmem:[#allocation5 + $0x18] sm:$0xff] }
  0x1e   :  { %281 = vmatpush3.msra.mxu0 %v60_v0  ;;  %310 = vmatpush3.msra.mxu1 %v60_v0  ;;  %v55_v5 = vld [vmem:[#allocation5 + $0x10] sm:$0xff]  ;;  %v54_v6 = vld [vmem:[#allocation5 + $0x8] sm:$0xff]  ;;  %v53_v7 = vld [vmem:[#allocation5] sm:$0xff]  ;;  %v167_v22 = vand.u32 127, %v166_v21 }
  0x1f   :  { %282 = vmatprep.subr.mxu0 %v59_v1  ;;  %303 = vmatprep.subr.mxu1 %v59_v1  ;;  %v49_v8 = vld [vmem:[#allocation2] sm:$0xff]  ;;  %v51_v9 = vld [vmem:[#allocation2 + $0x10] sm:$0xff]  ;;  %v50_v10 = vld [vmem:[#allocation2 + $0x8] sm:$0xff] }
  0x20   :  { %283 = vmatpush3.msra.mxu0 %v59_v1  ;;  %311 = vmatpush3.msra.mxu1 %v59_v1  ;;  %v52_v11 = vld [vmem:[#allocation2 + $0x18] sm:$0xff]  ;;  %v261_v14 = vld [vmem:[%s465_s2] ss:$0 sm:$0xff]  ;;  %vm168_vm1 = vcmp.lt.s32.totalorder %v167_v22, 32 }
  0x21   :  { %284 = vmatprep.subr.mxu0 %v58_v2  ;;  %304 = vmatprep.subr.mxu1 %v58_v2  ;;  %v266_v56 = vld [vmem:[%s466_s3] ss:$0 sm:$0xff]  ;;  %s248_s3 = sshll.u32 %s401_s8, 4  ;;  %s249_s3 = int_to_ptr.vmem [resolvable:$true] %s248_s3 }
  0x22   :  { %285 = vmatpush3.msra.mxu0 %v58_v2  ;;  %312 = vmatpush3.msra.mxu1 %v58_v2  ;;  %v267_v58 = vld [vmem:[%s467_s4] ss:$0 sm:$0xff]  ;;  %s371_s4 = scalar_lea.vmem %s249_s3, 512  ;;  %p376_p11 = scmp.lt.s32.totalorder %s249_s3, %s249_s3 }
  0x23   :  { %286 = vmatprep.subr.mxu0 %v57_v3  ;;  %305 = vmatprep.subr.mxu1 %v57_v3  ;;  %p372_p10 = scmp.ne.s32.totalorder %s249_s3, %s371_s4  ;;  %p377_p12 = scmp.lt.s32.totalorder %s371_s4, %s371_s4 }
  0x24   :  { %287 = vmatpush3.msra.mxu0 %v57_v3  ;;  %313 = vmatpush3.msra.mxu1 %v57_v3 }
  0x25   :  { %288 = vmatprep.subr.mxu0 %v56_v4  ;;  %306 = vmatprep.subr.mxu1 %v56_v4  ;;  %p378_p13 = por %p377_p12, %p376_p11 }
  0x26   :  { %289 = vmatpush3.msra.mxu0 %v56_v4  ;;  %314 = vmatpush3.msra.mxu1 %v56_v4 }
  0x27   :  { %290 = vmatprep.subr.mxu0 %v55_v5  ;;  %307 = vmatprep.subr.mxu1 %v55_v5  ;;  %p379_p0 = pnand %p378_p13, %p372_p10 }
  0x28   :  { %291 = vmatpush3.msra.mxu0 %v55_v5  ;;  %315 = vmatpush3.msra.mxu1 %v55_v5 }
  0x29   :  { %292 = vmatprep.subr.mxu0 %v54_v6  ;;  %308 = vmatprep.subr.mxu1 %v54_v6 }
  0x2a   :  { %293 = vmatpush3.msra.mxu0 %v54_v6  ;;  %316 = vmatpush3.msra.mxu1 %v54_v6 }
  0x2b   :  { %294 = vmatprep.subr.mxu0 %v53_v7  ;;  %309 = vmatprep.subr.mxu1 %v53_v7 }
  0x2c   :  { %295 = vmatpush3.msra.mxu0 %v53_v7  ;;  %317 = vmatpush3.msra.mxu1 %v53_v7 }
  0x2d   :  { %296 = vmatprep.mubr.msk.f32.mxu0 %vm68_vm0, %v49_v8  ;;  %299 = vmatprep.mubr.msk.f32.mxu1 %vm68_vm0, %v51_v9 }
  0x2e   :  { %297 = vmatmul.mubr.msk.f32.vlgmr.msra.gmra.mxu0 %vm68_vm0, %v50_v10  ;;  %300 = vmatmul.mubr.msk.f32.vlgmr.msra.gmra.mxu1 %vm68_vm0, %v52_v11 }
  0xee   :  { %v298_v12 = vpop.f32.mrf.mxu0  ;;  %v301_v13 = vpop.f32.mrf.mxu1 }
  0xef   :  { %v153_v19 = vadd.f32 %v298_v12, %v261_v14  ;;  %v163_v20 = vadd.f32 %v301_v13, %v261_v14 }
  0xf0   :  { %v147_v15 = vpop.f32.mrf.mxu0  ;;  %v157_v16 = vpop.f32.mrf.mxu1 }
  0xf1   :  { %v148_v17 = vadd.f32 %v261_v14, %v147_v15  ;;  %v158_v18 = vadd.f32 %v261_v14, %v157_v16 }
  0xf3   :  { %173 = vadd.xlane.f32.xlu1 %v158_v18  ;;  %169 = vadd.xlane.f32.xlu0 %v148_v17 }
  0xf7   :  { %175 = vadd.xlane.f32.xlu1 %v163_v20  ;;  %171 = vadd.xlane.f32.xlu0 %v153_v19 }
 0x17c   :  { %v174_v23 = vpop.xlane.xlu1 %173  ;;  %v170_v24 = vpop.xlane.xlu0 %169 }
 0x17d   :  { %v179_v25 = vmul.f32 0.03125, %v174_v23  ;;  %v177_v26 = vmul.f32 0.03125, %v170_v24 }
 0x17f   :  { %v183_v27 = vsub.f32 %v158_v18, %v179_v25  ;;  %v181_v28 = vsub.f32 %v148_v17, %v177_v26 }
 0x180   :  { %v176_v29 = vpop.xlane.xlu1 %175  ;;  %v172_v30 = vpop.xlane.xlu0 %171 }
 0x181   :  { %v180_v31 = vmul.f32 0.03125, %v176_v29  ;;  %v178_v32 = vmul.f32 0.03125, %v172_v30  ;;  %v185_v33 = vsel %vm168_vm1, %v181_v28, 0.0  ;;  %v187_v37 = vsel %vm168_vm1, %v183_v27, 0.0 }
 0x182   :  { %v189_v34 = vmul.f32 %v185_v33, %v185_v33  ;;  %v191_v39 = vmul.f32 %v187_v37, %v187_v37 }
 0x183   :  { %v184_v35 = vsub.f32 %v163_v20, %v180_v31  ;;  %v182_v36 = vsub.f32 %v153_v19, %v178_v32 }
 0x184   :  { %193 = vadd.xlane.f32.xlu0 %v189_v34 }
 0x185   :  { %v186_v38 = vsel %vm168_vm1, %v182_v36, 0.0  ;;  %v188_v41 = vsel %vm168_vm1, %v184_v35, 0.0 }
 0x186   :  { %v190_v40 = vmul.f32 %v186_v38, %v186_v38  ;;  %v192_v42 = vmul.f32 %v188_v41, %v188_v41 }
 0x188   :  { %197 = vadd.xlane.f32.xlu0 %v191_v39  ;;  %195 = vadd.xlane.f32.xlu1 %v190_v40 }
 0x18c   :  { %199 = vadd.xlane.f32.xlu1 %v192_v42 }
 0x20d   :  { %v194_v43 = vpop.xlane.xlu0 %193 }
 0x20e   :  { %v201_v44 = vmul.f32 0.03125, %v194_v43 }
 0x210   :  { %v205_v45 = vadd.f32 1e-05, %v201_v44 }
 0x211   :  { %v196_v46 = vpop.xlane.xlu1 %195  ;;  %v198_v47 = vpop.xlane.xlu0 %197 }
 0x212   :  { %323 = vrsqrt.f32 %v205_v45  ;;  %v202_v48 = vmul.f32 0.03125, %v196_v46  ;;  %v203_v49 = vmul.f32 0.03125, %v198_v47 }
 0x214   :  { %v206_v50 = vadd.f32 1e-05, %v202_v48  ;;  %v207_v51 = vadd.f32 1e-05, %v203_v49 }
 0x215   :  { %v200_v52 = vpop.xlane.xlu1 %199 }
 0x216   :  { %325 = vrsqrt.f32 %v206_v50  ;;  %v204_v53 = vmul.f32 0.03125, %v200_v52 }
 0x217   :  { %327 = vrsqrt.f32 %v207_v51 }
 0x218   :  { %v208_v54 = vadd.f32 1e-05, %v204_v53 }
 0x21a   :  { %329 = vrsqrt.f32 %v208_v54 }
 0x21f   :  { %v324_v55 = vpop.eup %323 }
 0x220   :  { %v213_v57 = vmul.f32 %v324_v55, %v185_v33 }
 0x222   :  { %v224_v59 = vmul.f32 %v266_v56, %v213_v57 }
 0x223   :  { %v326_v60 = vpop.eup %325 }
 0x224   :  { %v328_v61 = vpop.eup %327  ;;  %v214_v62 = vmul.f32 %v326_v60, %v186_v38  ;;  %v235_v63 = vadd.f32 %v267_v58, %v224_v59 }
 0x225   :  { %v215_v0 = vmul.f32 %v328_v61, %v187_v37 }
 0x226   :  { %v225_v1 = vmul.f32 %v266_v56, %v214_v62  ;;  %239 = vst [vmem:[#allocation7] sm:$0xff] %v235_v63 }
 0x227   :  { %v330_v2 = vpop.eup %329  ;;  %v226_v3 = vmul.f32 %v266_v56, %v215_v0 }
 0x228   :  { %v216_v4 = vmul.f32 %v330_v2, %v188_v41  ;;  %v236_v5 = vadd.f32 %v267_v58, %v225_v1 }
 0x229   :  { %v237_v6 = vadd.f32 %v267_v58, %v226_v3 }
 0x22a   :  { %v227_v7 = vmul.f32 %v266_v56, %v216_v4  ;;  %240 = vst [vmem:[#allocation7 + $0x8] sm:$0xff] %v236_v5 }
 0x22b   :  { %241 = vst [vmem:[#allocation7 + $0x10] sm:$0xff] %v237_v6 }
 0x22c   :  { %v238_v8 = vadd.f32 %v267_v58, %v227_v7 }
 0x22e   :  { %242 = vst [vmem:[#allocation7 + $0x18] sm:$0xff] %v238_v8 }
 0x22f   :  { %382 = shalt.err (!%p379_p0)
}
 0x230   :  { %254 = dma.vmem_to_hbm [thread:$0]  %s249_s3, 512, %s468_s5, [#allocation4], %s398_s21, %s398_s21, %s399_s22  }
 0x231   :  { %395 = dma.done.wait [#allocation4], 512  }
 0x232   :  { %396 = vsyncadd [#allocation4], 4294966784 }
 0x233   :  { %258 = vsyncpa [#allocation3], 1 }
 0x234   :  { %259 = vsyncpa [#allocation6], 1 }
 0x235   :  { %260 = vsyncpa [#allocation4], 1 }

</bundles_post_ra>
